<compile_context>
chip_gen: v6e
topology: v6e:2x2x1
jax: 0.10.0
libtpu: 0.0.40
codegen_flags: <defaults>
</compile_context>

<pallas_src>
import functools
import math

import jax
import jax.numpy as jnp
from jax.experimental import pallas as pl
from jax.experimental.pallas import tpu as pltpu


# Per-grid-step double-buffered (in + out) working-set target and the scoped
# VMEM limit handed to Mosaic.  Both are safe on v5e/v6e (128 MiB VMEM) and on
# v7x (64 MiB per TensorCore).
_STEP_BUDGET_BYTES = 16 << 20
_VMEM_LIMIT_BYTES = 48 << 20


def _pad_last2_kernel(x_ref, o_ref, *, pad_h, pad_w):
    """Zero-pad a (TB, H, W) input block into a (TB, PH, PW) output block, centered.

    The padded block is composed in registers (zero strips concatenated around
    the loaded input) and written with a single full-block store, so every
    output vreg is stored exactly once (no masked-store write amplification).
    """
    tb, h, w = x_ref.shape
    dt = o_ref.dtype
    x = x_ref[...]
    if pad_w:
        zw = jnp.zeros((tb, h, pad_w), dt)
        x = jnp.concatenate([zw, x, zw], axis=2)        # lane-axis compose (XLU)
    if pad_h:
        zh = jnp.zeros((tb, pad_h, w + 2 * pad_w), dt)
        x = jnp.concatenate([zh, x, zh], axis=1)        # sublane-axis compose
    o_ref[...] = x                                      # one full-block store


def _tile_bytes(rows, cols, itemsize):
    """VMEM footprint of one (rows, cols) tile after (sublane, 128-lane) padding."""
    row_mult = max(8, 32 // itemsize)          # f32 -> 8, bf16 -> 16, int8 -> 32
    rr = ((rows + row_mult - 1) // row_mult) * row_mult
    cc = ((cols + 127) // 128) * 128
    return rr * cc * itemsize


def _choose_batch_block(n, H, W, PH, PW, itemsize):
    """Pick how many images to pad per grid step."""
    per_image = 2 * (_tile_bytes(H, W, itemsize) + _tile_bytes(PH, PW, itemsize))
    tb = max(1, _STEP_BUDGET_BYTES // per_image)
    tb = min(tb, n)
    # Keep >= 2 grid steps per TensorCore (v7x has 2 TCs sharding the "parallel"
    # axis) so each core double-buffers its DMAs instead of exposing them.
    if n >= 4:
        tb = min(tb, pl.cdiv(n, 4))
    elif n > 1:
        tb = min(tb, pl.cdiv(n, 2))
    return int(tb)


class PadLast:
    """Pallas/TPU re-implementation of mr_recon.pad.PadLast (forward + adjoint).

    Pads the last `im_dim` dimensions of x from im_size -> pad_im_size with zeros,
    split evenly on both sides (pad sizes must be even). im_dim == 2 is implemented
    as a Pallas kernel.
    """

    def __init__(self, pad_im_size, im_size):
        assert len(pad_im_size) == len(im_size)
        self.im_dim = len(im_size)
        assert self.im_dim == 2, "Pallas kernel implemented for 2D image dims"
        self.im_size = tuple(int(s) for s in im_size)
        self.pad_im_size = tuple(int(s) for s in pad_im_size)
        for psz in self.pad_im_size:
            assert not psz % 2, "Pad sizes must be even"
        self.half_pad = tuple(
            (psz - isz) // 2 for psz, isz in zip(self.pad_im_size, self.im_size)
        )
        for hp, psz, isz in zip(self.half_pad, self.pad_im_size, self.im_size):
            assert 2 * hp + isz == psz, "pad must be symmetric (even difference)"

    # ---------------------------------------------------------------- forward
    def forward(self, x):
        assert tuple(x.shape[-self.im_dim:]) == self.im_size
        if jnp.issubdtype(x.dtype, jnp.complexfloating):
            H, W = self.im_size
            PH, PW = self.pad_im_size
            lead_shape = tuple(x.shape[:-self.im_dim])
            real_dt = jnp.float64 if x.dtype == jnp.dtype(jnp.complex128) else jnp.float32
            # Interleaved (re, im) float view: one fused XLA pass in, one out,
            # and a SINGLE pad kernel with pad_w doubled (pairs stay intact
            # because the per-side pad in the view is 2*pad_w).
            xr = jnp.stack([jnp.real(x), jnp.imag(x)], axis=-1).astype(real_dt)
            xr = xr.reshape(lead_shape + (H, 2 * W))
            yr = self._pad_real(xr, width_scale=2)
            yr = yr.reshape(lead_shape + (PH, PW, 2))
            return jax.lax.complex(yr[..., 0], yr[..., 1]).astype(x.dtype)
        return self._pad_real(x, width_scale=1)

    def _pad_real(self, x, width_scale):
        """Pad a real array whose last two dims are (H, W * width_scale)."""
        H, W = self.im_size
        PH, PW = self.pad_im_size
        pad_h, pad_w = self.half_pad
        Wv, PWv, pad_wv = W * width_scale, PW * width_scale, pad_w * width_scale

        if pad_h == 0 and pad_w == 0:
            return x  # identity pad

        lead_shape = tuple(x.shape[:-2])
        out_full_shape = lead_shape + (PH, PWv)
        n = math.prod(lead_shape)  # () -> 1
        if n == 0:
            return jnp.zeros(out_full_shape, dtype=x.dtype)

        x_flat = x.reshape((n, H, Wv))
        itemsize = jnp.dtype(x.dtype).itemsize
        tb = _choose_batch_block(n, H, Wv, PH, PWv, itemsize)
        grid = (pl.cdiv(n, tb),)  # ragged last block: Pallas clips output writes
        # TODO(synk): a single image larger than the VMEM budget would need H-tiling.
        # TODO(synk): for production shapes with W/PW < 128, restructure to a
        # lane-dense (tb, H*W)/(tb, PH*PW) layout to avoid 8x VMEM tile padding
        # and sub-burst DMA rows (no-op for lane-aligned sizes, so not done here).

        kernel = functools.partial(_pad_last2_kernel, pad_h=pad_h, pad_w=pad_wv)

        out_flat = pl.pallas_call(
            kernel,
            out_shape=jax.ShapeDtypeStruct((n, PH, PWv), x.dtype),
            grid_spec=pltpu.PrefetchScalarGridSpec(
                num_scalar_prefetch=0,
                grid=grid,
                in_specs=[pl.BlockSpec((tb, H, Wv), lambda i: (i, 0, 0))],
                out_specs=pl.BlockSpec((tb, PH, PWv), lambda i: (i, 0, 0)),
            ),
            compiler_params=pltpu.CompilerParams(
                dimension_semantics=("parallel",),
                vmem_limit_bytes=_VMEM_LIMIT_BYTES,
            ),
        )(x_flat)

        return out_flat.reshape(out_full_shape)

    # ---------------------------------------------------------------- adjoint
    def adjoint(self, y):
        """Crop the last im_dim dims back to im_size (plain slicing, no kernel)."""
        assert tuple(y.shape[-self.im_dim:]) == self.pad_im_size
        H, W = self.im_size
        pad_h, pad_w = self.half_pad
        return y[..., pad_h:pad_h + H, pad_w:pad_w + W]

    __call__ = forward


if __name__ == "__main__":
    key = jax.random.PRNGKey(0)
    B, C, H, W = 2, 4, 16, 16
    PH, PW = 24, 24
    ph, pw = (PH - H) // 2, (PW - W) // 2

    pad_mod = PadLast(pad_im_size=(PH, PW), im_size=(H, W))

    # float32, batched leading dims (n = 8 images -> 4 grid steps, 2 per TC on v7x)
    x = jax.random.normal(key, (B, C, H, W), dtype=jnp.float32)
    y = jax.block_until_ready(pad_mod(x))
    y_ref = jnp.pad(x, ((0, 0), (0, 0), (ph, ph), (pw, pw)))
    assert y.shape == (B, C, PH, PW)
    assert y.dtype == x.dtype
    assert jnp.allclose(y, y_ref), "float32 pad output mismatch vs reference"

    # complex64 with a ragged leading dim (n = 3) — exercises the interleaved
    # float-view path (single pad pass, pad_w doubled) against jnp.pad.
    kr, ki = jax.random.split(key)
    xc = (jax.random.normal(kr, (3, H, W), dtype=jnp.float32)
          + 1j * jax.random.normal(ki, (3, H, W), dtype=jnp.float32)).astype(jnp.complex64)
    yc = jax.block_until_ready(pad_mod(xc))
    yc_ref = jnp.pad(xc, ((0, 0), (ph, ph), (pw, pw)))
    assert yc.shape == (3, PH, PW)
    assert yc.dtype == xc.dtype
    assert jnp.allclose(yc, yc_ref), "complex64 pad output mismatch vs reference"

    # adjoint (crop) round-trip
    assert jnp.allclose(pad_mod.adjoint(y), x), "adjoint(forward(x)) != x"

    # identity pad (pad_im_size == im_size) short-circuit
    ident = PadLast(pad_im_size=(H, W), im_size=(H, W))
    assert jnp.allclose(ident(x), x)
    assert jnp.allclose(ident.adjoint(x), x)

    print("KERNEL_OK")
</pallas_src>

<mosaic_0001>
module attributes {stable_mosaic.version = 11 : i64} {
  func.func @_pad_last2_kernel(%arg0: i32, %arg1: memref<2x16x16xf32, #tpu.memory_space<vmem>>, %arg2: memref<2x24x24xf32, #tpu.memory_space<vmem>>) attributes {dimension_semantics = [#tpu.dimension_semantics<parallel>], iteration_bounds = array<i64: 4>, scalar_prefetch = 0 : i64, scratch_operands = 0 : i64, tpu.core_type = #tpu.core_type<tc>, window_params = [{transform_indices = @transform_0, window_bounds = array<i64: 2, 16, 16>}, {transform_indices = @transform_1, window_bounds = array<i64: 2, 24, 24>}]} {
    %c0 = arith.constant 0 : index
    %c0_0 = arith.constant 0 : index
    %c0_1 = arith.constant 0 : index
    %0 = vector.load %arg1[%c0, %c0_0, %c0_1] : memref<2x16x16xf32, #tpu.memory_space<vmem>>, vector<2x16x16xf32>
    %cst = arith.constant 0.000000e+00 : f32
    %1 = vector.broadcast %cst : f32 to vector<2x16x4xf32>
    %2 = tpu.concatenate %1, %0, %1 in 2 : vector<2x16x4xf32>, vector<2x16x16xf32>, vector<2x16x4xf32> -> vector<2x16x24xf32>
    %cst_2 = arith.constant 0.000000e+00 : f32
    %3 = vector.broadcast %cst_2 : f32 to vector<2x4x24xf32>
    %4 = tpu.concatenate %3, %2, %3 in 1 : vector<2x4x24xf32>, vector<2x16x24xf32>, vector<2x4x24xf32> -> vector<2x24x24xf32>
    %c0_3 = arith.constant 0 : index
    %c0_4 = arith.constant 0 : index
    %c0_5 = arith.constant 0 : index
    %5 = vector.load %arg2[%c0_3, %c0_4, %c0_5] : memref<2x24x24xf32, #tpu.memory_space<vmem>>, vector<2x24x24xf32>
    tpu.vector_store %arg2[%c0_3, %c0_4, %c0_5], %4 {strides = array<i32>} : memref<2x24x24xf32, #tpu.memory_space<vmem>>, vector<2x24x24xf32>,
    return
  }
  func.func @transform_0(%arg0: i32) -> (i32, i32, i32) {
    %c0_i32 = arith.constant 0 : i32
    %c0_i32_0 = arith.constant 0 : i32
    %c0_i32_1 = arith.constant 0 : i32
    return %arg0, %c0_i32, %c0_i32_0 : i32, i32, i32
  }
  func.func @transform_1(%arg0: i32) -> (i32, i32, i32) {
    %c0_i32 = arith.constant 0 : i32
    %c0_i32_0 = arith.constant 0 : i32
    %c0_i32_1 = arith.constant 0 : i32
    return %arg0, %c0_i32, %c0_i32_0 : i32, i32, i32
  }
}

</mosaic_0001>

<bundles_post_ra>
// kernel: tpu_custom_call.1
= control target key start
LH: loop header
LB: loop body
LE: loop exit
PB: predicated region body
PF: predicated region fallthrough
CT: control target
= control target key end

     0   :  { %6 = vsyncpa [#allocation3], 0  ;;  %s637_s0 = inlined_call_operand.hbm [shape: f32[8,16,16], index: 0, kind: input, shape index: {}]   ;;  %s638_s1 = inlined_call_operand.hbm [shape: f32[8,24,24], index: 1, kind: output, shape index: {}]  }
   0x1   :  { %8 = vsyncpa [#allocation3 + $0x1], 0 }
   0x2   :  { %9 = vsyncpa [#allocation4], 0 }
   0x3   :  { %11 = vsyncpa [#allocation4 + $0x1], 0  ;;  %s464_s6 = smov 0   ;;  %s466_s7 = smov 0  }
   0x4   :  { %s468_s8 = smov 0   ;;  %s470_s9 = smov 0  }
   0x5 LB: > { %s485_s10 = sadd.s32 4294967295, %s445_s9   ;;  %s284_s11 = sadd.s32 4294967294, %s445_s9   ;;  %s445_s9 = sphi %s470_s9, %s652_s9   ;;  %s441_s8 = sphi %s468_s8, %s651_s8   ;;  %s437_s7 = sphi %s466_s7, %s650_s7   ;;  %s433_s6 = sphi %s464_s6, %s649_s6  }
   0x6   : > { %s489_s12 = sadd.s32 1, %s445_s9   ;;  %s24_s13 = sadd.s32 1, %s441_s8 }
   0x7   : > { %s21_s14 = ssub.s32 %s445_s9, %s489_s12  ;;  %p31_p0 = scmp.ne.s32.totalorder %s441_s8, %s437_s7 }
   0x8   : > { %p22_p1 = scmp.eq.s32.totalorder %s21_s14, 0  ;;  %p32_p2 = scmp.eq.s32.totalorder %s445_s9, 0 }
   0x9   : > { %p37_p3 = scmp.ne.s32.totalorder %s437_s7, %s433_s6  ;;  %p38_p4 = scmp.eq.s32.totalorder %s485_s10, 0 }
   0xa   : > { %s501_s15 = scalar_select %p22_p1, %s441_s8, %s24_s13  }
   0xb   : > { %p503_p5 = por %p32_p2, %p31_p0  ;;  %p507_p6 = por %p38_p4, %p37_p3 }
   0xc   : > { %p61_p7 = scmp.eq.s32.totalorder %s485_s10, 3  ;;  %p67_p8 = scmp.eq.s32.totalorder %s284_s11, 3 }
   0xd   : > { %s642_s17 = scalar_select %p507_p6, 1, 0 }
   0xe   : > { %p314_p9 = scmp.lt.s32.totalorder %s445_s9, 4  ;;  %p513_p10 = por %p61_p7, %p31_p0 }
   0xf   : > { %p517_p11 = por %p67_p8, %p37_p3  ;;  %s87_s20 = sand.u32 1, %s441_s8  }
  0x10   : > { %s643_s18 = scalar_select %p513_p10, 1, 0 }
  0x11   : > { %s644_s19 = scalar_select %p517_p11, 1, 0 }
  0x12   : > { %s299_s21 = sshll.u32 %s445_s9, 9  ;;  %s287_s22 = sshll.u32 %s87_s20, 5 }
  0x13   : > { %s526_s25 = scalar_lea.hbm %s637_s0, %s299_s21  ;;  %s91_s26 = scalar_lea.vmem [#allocation2], %s287_s22 }
  0x14   : > { %s99_s27 = sshll.u32 %s91_s26, 4  ;;  %p530_p12 = pnand %p314_p9, %p503_p5  ;;  %s534_s27 = int_to_ptr.vmem [resolvable:$true] %s99_s27 }
  0x15   : > { %s536_s29 = scalar_lea.sflag [#allocation3], %s87_s20  ;;  %s353_s30 = scalar_lea.hbm %s526_s25, 512 }
  0x16   : > { %p354_p13 = scmp.ne.s32.totalorder %s526_s25, %s353_s30  ;;  %p355_p0 = pneg %p530_p12 }
  0x17   : > { %s358_s4 = scalar_lea.hbm %s637_s0, 2048  ;;  %p359_p3 = scmp.lt.s32.totalorder %s526_s25, %s637_s0 }
  0x18   : > { %p356_p1 = pnand %p355_p0, %p354_p13  ;;  %p360_p4 = scmp.lt.s32.totalorder %s358_s4, %s353_s30 }
  0x1a   : > { %p357_p2 = pneg %p356_p1  ;;  %p361_p5 = por %p360_p4, %p359_p3 }
  0x1c   : > { %p362_p7 = pnand %p361_p5, %p357_p2 }
  0x1e   : > { %365 = shalt.err (!%p362_p7)
}
  0x1f   : > { %s366_s13 = scalar_lea.vmem %s534_s27, 512  ;;  %s447_s14 = smov [#allocation2]  }
  0x20   : > { %p367_p8 = scmp.ne.s32.totalorder %s534_s27, %s366_s13  ;;  %s371_s16 = sshll.u32 %s447_s14, 4  ;;  %s372_s16 = int_to_ptr.vmem [resolvable:$false] %s371_s16 }
  0x21   : > { %s373_s20 = scalar_lea.vmem %s372_s16, 1024  ;;  %p374_p1 = scmp.lt.s32.totalorder %s534_s27, %s372_s16 }
  0x22   : > { %p369_p9 = pnand %p367_p8, %p355_p0  ;;  %p375_p11 = scmp.lt.s32.totalorder %s373_s20, %s366_s13 }
  0x24   : > { %p370_p13 = pneg %p369_p9  ;;  %p376_p10 = por %p375_p11, %p374_p1 }
  0x26   : > { %p377_p6 = pnand %p376_p10, %p370_p13 }
  0x28   : > { %380 = shalt.err (!%p377_p6)
}
  0x29   : > { %s448_s21 = smov 128   ;;  %s449_s22 = smov 8  }
  0x2a   : > { %309 = dma.hbm_to_vmem [thread:$0]  (!%p530_p12), %s526_s25, 512, %s534_s27, %s536_s29, %s448_s21, %s448_s21, %s449_s22  }
  0x2b   : > { %p291_p0 = scmp.ge.s32.totalorder %s445_s9, 1  ;;  %p107_p2 = scmp.lt.s32.totalorder %s445_s9, 5 }
  0x2d   : > { %p108_p3 = pnand %p291_p0, %p107_p2 }
  0x2e   : > { %s560_s23 = sand.u32 (!%p108_p3), 1, %s437_s7   ;;  %p646_p6 = scmp.ne.s32.totalorder (!%p108_p3), %s642_s17, 0 }
  0x2f   : > { %111 = sbr.rel (%p108_p3) target bundleno = 193 (0xc1), region = 24  ;;  %s292_s24 = sshll.u32 (!%p108_p3), %s560_s23, 5 }
  0x30   : > { %s114_s26 = scalar_lea.sflag (!%p108_p3), [#allocation3], %s560_s23  ;;  %s117_s30 = scalar_lea.vmem (!%p108_p3), [#allocation2], %s292_s24 }
  0x34   : > { %424 = dma.done.wait (%p646_p6), %s114_s26, 512  }
  0x35   : > { %426 = vsyncadd (%p646_p6), %s114_s26, 4294966784  ;;  %v140_v0 = vld [vmem:[%s117_s30 + $0x10] sm:$0xff]  ;;  %v138_v1 = vld [vmem:[%s117_s30] sm:$0xff]  ;;  %s450_s25 = smov 4   ;;  %s300_s27 = smul.u32 48, %s560_s23  ;;  %vm158_vm0 = vcmask 31744  }
  0x36   : > { %150 = vrot.lane.b32.xlu1 %v140_v0, %s450_s25  ;;  %146 = vrot.lane.b32.xlu0 %v138_v1, %s450_s25  ;;  %v141_v2 = vld [vmem:[%s117_s30 + $0x18] sm:$0xff]  ;;  %v139_v3 = vld [vmem:[%s117_s30 + $0x8] sm:$0xff]  ;;  %vm163_vm1 = vcmask 162816   ;;  %vm172_vm2 = vcmask 1043456   ;;  %vm189_vm3 = vcmask 195584   ;;  %s301_s29 = smul.u32 768, %s485_s10 }
  0x37   : > { %s135_s17 = scalar_lea.vmem [#allocation5], %s300_s27  ;;  %s197_s4 = scalar_lea.sflag [#allocation4], %s560_s23 }
  0x38   : > { %s211_s28 = sshll.u32 %s135_s17, 4  ;;  %s587_s3 = scalar_lea.hbm %s638_s1, %s301_s29  ;;  %s578_s28 = int_to_ptr.vmem [resolvable:$true] %s211_s28 }
  0x39   : > { %s381_s5 = scalar_lea.vmem %s578_s28, 768  ;;  %p647_p11 = scmp.ne.s32.totalorder %s643_s18, 0 }
  0x3a   : > { %152 = vrot.lane.b32.xlu1 %v141_v2, %s450_s25  ;;  %148 = vrot.lane.b32.xlu0 %v139_v3, %s450_s25  ;;  %p382_p10 = scmp.ne.s32.totalorder %s578_s28, %s381_s5  ;;  %s451_s11 = smov [#allocation5]  }
  0x3b   : > { %s385_s13 = sshll.u32 %s451_s11, 4  ;;  %s386_s13 = int_to_ptr.vmem [resolvable:$false] %s385_s13 }
  0x3c   : > { %p383_p12 = pnand %p382_p10, %p647_p11  ;;  %s387_s14 = scalar_lea.vmem %s386_s13, 1536 }
  0x3d   : > { %p388_p5 = scmp.lt.s32.totalorder %s578_s28, %s386_s13  ;;  %p389_p7 = scmp.lt.s32.totalorder %s387_s14, %s381_s5 }
  0x3e   : > { %p384_p4 = pneg %p383_p12 }
  0x3f   : > { %p390_p8 = por %p389_p7, %p388_p5 }
  0x41   : > { %p391_p9 = pnand %p390_p8, %p384_p4 }
  0xa8   : > { %v151_v4 = vpop.permute.xlu1 %150  ;;  %v147_v5 = vpop.permute.xlu0 %146 }
  0xa9   : > { %v161_v6 = vsel %vm158_vm0, 0.0, %v151_v4  ;;  %v159_v7 = vsel %vm158_vm0, 0.0, %v147_v5 }
  0xaa   : > { %v166_v8 = vsel %vm163_vm1, %v161_v6, 0.0  ;;  %v164_v9 = vsel %vm163_vm1, %v159_v7, 0.0 }
  0xab   : > { %v176_v10 = vrot.slane %v166_v8, 4  ;;  %v173_v11 = vrot.slane %v164_v9, 4 }
  0xac   : > { %v153_v12 = vpop.permute.xlu1 %152  ;;  %v149_v13 = vpop.permute.xlu0 %148 }
  0xad   : > { %v186_v14 = vsel %vm172_vm2, 0.0, %v176_v10  ;;  %v185_v15 = vsel %vm172_vm2, 0.0, %v173_v11  ;;  %v162_v16 = vsel %vm158_vm0, 0.0, %v153_v12  ;;  %v160_v17 = vsel %vm158_vm0, 0.0, %v149_v13 }
  0xae   : > { %193 = vst.msk [vmem:[%s135_s17 + $0x18] sm:$0xff] %vm189_vm3, %v186_v14  ;;  %190 = vst.msk [vmem:[%s135_s17] sm:$0xff] %vm189_vm3, %v185_v15  ;;  %v167_v18 = vsel %vm163_vm1, %v162_v16, 0.0  ;;  %v165_v19 = vsel %vm163_vm1, %v160_v17, 0.0 }
  0xaf   : > { %v177_v20 = vrot.slane %v167_v18, 4  ;;  %v174_v21 = vrot.slane %v165_v19, 4 }
  0xb1   : > { %v178_v22 = vsel %vm172_vm2, %v176_v10, %v177_v20  ;;  %v188_v23 = vsel %vm172_vm2, %v177_v20, 0.0  ;;  %v175_v24 = vsel %vm172_vm2, %v173_v11, %v174_v21  ;;  %v187_v25 = vsel %vm172_vm2, %v174_v21, 0.0 }
  0xb2   : > { %194 = vst.msk [vmem:[%s135_s17 + $0x20] sm:$0xff] %vm189_vm3, %v178_v22  ;;  %195 = vst.msk [vmem:[%s135_s17 + $0x28] sm:$0xff] %vm189_vm3, %v188_v23 }
  0xb3   : > { %191 = vst.msk [vmem:[%s135_s17 + $0x8] sm:$0xff] %vm189_vm3, %v175_v24  ;;  %192 = vst.msk [vmem:[%s135_s17 + $0x10] sm:$0xff] %vm189_vm3, %v187_v25 }
  0xb4   : > { %394 = shalt.err (!%p391_p9)
}
  0xb5   : > { %s395_s16 = scalar_lea.hbm %s587_s3, 768  ;;  %s399_s22 = scalar_lea.hbm %s638_s1, 3072 }
  0xb6   : > { %p396_p13 = scmp.ne.s32.totalorder %s587_s3, %s395_s16  ;;  %p400_p2 = scmp.lt.s32.totalorder %s587_s3, %s638_s1 }
  0xb7   : > { %p401_p3 = scmp.lt.s32.totalorder %s399_s22, %s395_s16 }
  0xb8   : > { %p397_p1 = pnand %p396_p13, %p647_p11 }
  0xb9   : > { %p402_p6 = por %p401_p3, %p400_p2 }
  0xba   : > { %p398_p0 = pneg %p397_p1 }
  0xbc   : > { %p403_p10 = pnand %p402_p6, %p398_p0 }
  0xbe   : > { %406 = shalt.err (!%p403_p10)
}
  0xbf   : > { %s452_s30 = smov 128   ;;  %s453_s25 = smov 8  }
  0xc0   : > { %304 = dma.vmem_to_hbm [thread:$0]  (%p647_p11), %s578_s28, 768, %s587_s3, %s197_s4, %s452_s30, %s452_s30, %s453_s25  }
  0xc1 PF: > { %p315_p12 = scmp.ge.s32.totalorder %s445_s9, 2  ;;  %s226_s27 = sand.u32 1, %s433_s6  }
  0xc2   : > { %p648_p4 = scmp.ne.s32.totalorder %s644_s19, 0  ;;  %s227_s17 = scalar_lea.sflag [#allocation4], %s226_s27 }
  0xc4   : > { %p311_p5 = pnand %p315_p12, %p648_p4 }
  0xc6   : > { %p312_p7 = pneg %p311_p5 }
  0xc8   : > { %428 = dma.done.wait (%p312_p7), %s227_s17, 768  }
  0xc9   : > { %430 = vsyncadd (%p312_p7), %s227_s17, 4294966528  ;;  %p14_p8 = scmp.ge.s32.totalorder %s489_s12, 6   ;;  %s649_s6 = smov %s437_s7 }
  0xca   : > { %s650_s7 = smov %s441_s8  ;;  %s651_s8 = smov %s501_s15 }
  0xcb   : > { %s652_s9 = smov %s489_s12  ;;  %16 = sbr.rel (!%p14_p8) target bundleno = 5 (0x5), region = 69 }
  0xd0   :  { %232 = vsyncpa [#allocation3], 1 }
  0xd1   :  { %234 = vsyncpa [#allocation3 + $0x1], 1 }
  0xd2   :  { %235 = vsyncpa [#allocation4], 1 }
  0xd3   :  { %237 = vsyncpa [#allocation4 + $0x1], 1 }

</bundles_post_ra>
